<compile_context>
chip_gen: v7x
topology: tpu7x:2x2x1
jax: 0.10.0
libtpu: 0.0.40
codegen_flags: <defaults>
</compile_context>

<pallas_src>
import jax
import jax.numpy as jnp
from jax import lax
from jax.experimental import pallas as pl
from jax.experimental.pallas import tpu as pltpu


IN_FEATURES = 10
OUT_FEATURES = 200
OUT_PADDED = 256  # next multiple of 128 so MXU pushes / accumulator are lane-dense


def _mymodel_kernel(x_ref, w2_ref, b2_ref, o_ref):
    x = x_ref[...]            # (B, K=10)          f32
    w = w2_ref[...]           # (K=10, N_pad=256)  f32, pre-transposed at prep time
    # Canonical (M,K) x (K,N) contraction -> MXU, no in-kernel weight relayout.
    acc = lax.dot_general(
        x, w,
        dimension_numbers=(((1,), (0,)), ((), ())),
        preferred_element_type=jnp.float32,
    )                         # (B, 256)
    out = acc + b2_ref[...]   # bias broadcast (1, 256)
    # Write the real (B, 200) output directly; tail lane-tile is a masked store.
    o_ref[...] = out[:, :OUT_FEATURES].astype(o_ref.dtype)


def prepare_params(w2, b2):
    """One-time (outside the hot path) param prep.

    w2: (200, 10) f32 PyTorch-layout fc2 weight; b2: (200,) f32 fc2 bias.
    Returns:
      w2_t:   (10, 256) f32 — transposed to (K, N) and N zero-padded to 256.
      b2_pad: (1, 256)  f32 — bias zero-padded to 256.
    Padded columns are zero, so they are inert and never reach the output.
    """
    n, k = w2.shape
    pad_n = OUT_PADDED - n
    w2_t = jnp.pad(w2.T, ((0, 0), (0, pad_n)))            # (K, N_pad) = (10, 256)
    b2_pad = jnp.pad(b2, (0, pad_n)).reshape(1, OUT_PADDED)
    return w2_t, b2_pad


@jax.jit
def mymodel_forward(inp, w2_t, b2_pad):
    """inp: (B, 10) f32; w2_t: (10, 256) f32; b2_pad: (1, 256) f32.

    Returns fc2(inp) with shape (B, 200). fc1 of the PyTorch module is dead code
    (its result is unobservable) and is not computed.
    """
    B, _ = inp.shape
    return pl.pallas_call(
        _mymodel_kernel,
        out_shape=jax.ShapeDtypeStruct((B, OUT_FEATURES), jnp.float32),
        in_specs=[
            pl.BlockSpec(memory_space=pltpu.MemorySpace.VMEM),
            pl.BlockSpec(memory_space=pltpu.MemorySpace.VMEM),
            pl.BlockSpec(memory_space=pltpu.MemorySpace.VMEM),
        ],
        out_specs=pl.BlockSpec(memory_space=pltpu.MemorySpace.VMEM),
    )(inp, w2_t, b2_pad)


if __name__ == "__main__":
    key = jax.random.PRNGKey(0)
    k_inp, k_w1, k_w2, k_b2 = jax.random.split(key, 4)

    B = 8
    inp = jax.random.normal(k_inp, (B, IN_FEATURES), dtype=jnp.float32)

    # Deterministic parameter init (PyTorch-style uniform bound 1/sqrt(fan_in)).
    bound = 1.0 / jnp.sqrt(jnp.float32(IN_FEATURES))
    # fc1 weight exists in the module but its output is dead; it is not used here.
    _w1 = jax.random.uniform(k_w1, (OUT_FEATURES, IN_FEATURES), jnp.float32, -bound, bound)
    w2 = jax.random.uniform(k_w2, (OUT_FEATURES, IN_FEATURES), jnp.float32, -bound, bound)
    b2 = jax.random.uniform(k_b2, (OUT_FEATURES,), jnp.float32, -bound, bound)

    # One-time param prep (transpose + pad) outside the hot path.
    w2_t, b2_pad = prepare_params(w2, b2)
    w2_t, b2_pad = jax.block_until_ready((w2_t, b2_pad))

    out = mymodel_forward(inp, w2_t, b2_pad)
    out = jax.block_until_ready(out)

    # Reference check in plain JAX (mirrors the PyTorch forward: return fc2(inp)).
    ref = inp @ w2.T + b2
    assert out.shape == (B, OUT_FEATURES), out.shape
    assert jnp.allclose(out, ref, atol=1e-4, rtol=1e-4), "mismatch vs reference"

    print("KERNEL_OK")
</pallas_src>

<mosaic_0001>
module attributes {stable_mosaic.version = 11 : i64} {
  func.func @_mymodel_kernel(%arg0: memref<8x10xf32, #tpu.memory_space<vmem>>, %arg1: memref<10x256xf32, #tpu.memory_space<vmem>>, %arg2: memref<1x256xf32, #tpu.memory_space<vmem>>, %arg3: memref<8x200xf32, #tpu.memory_space<vmem>>) attributes {dimension_semantics = [], scalar_prefetch = 0 : i64, scratch_operands = 0 : i64, tpu.core_type = #tpu.core_type<tc>} {
    %c0 = arith.constant 0 : index
    %c0_0 = arith.constant 0 : index
    %0 = vector.load %arg0[%c0, %c0_0] : memref<8x10xf32, #tpu.memory_space<vmem>>, vector<8x10xf32>
    %c0_1 = arith.constant 0 : index
    %c0_2 = arith.constant 0 : index
    %1 = vector.load %arg1[%c0_1, %c0_2] : memref<10x256xf32, #tpu.memory_space<vmem>>, vector<10x256xf32>
    %cst = arith.constant dense<0.000000e+00> : vector<8x256xf32>
    %2 = tpu.matmul %0, %1, %cst {dimension_numbers = #tpu.dot_dimension_numbers<[1], [0], [0], [1], [0, 0, 1, 1], [], []>} : vector<8x10xf32>, vector<10x256xf32>, vector<8x256xf32> -> vector<8x256xf32>
    %c0_3 = arith.constant 0 : index
    %c0_4 = arith.constant 0 : index
    %3 = vector.load %arg2[%c0_3, %c0_4] : memref<1x256xf32, #tpu.memory_space<vmem>>, vector<1x256xf32>
    %4 = vector.broadcast %3 : vector<1x256xf32> to vector<8x256xf32>
    %5 = arith.addf %2, %4 : vector<8x256xf32>
    %6 = vector.extract_strided_slice %5 {offsets = [0, 0], sizes = [8, 200], strides = [1, 1]} : vector<8x256xf32> to vector<8x200xf32>
    %c0_5 = arith.constant 0 : index
    %c0_6 = arith.constant 0 : index
    %7 = vector.load %arg3[%c0_5, %c0_6] : memref<8x200xf32, #tpu.memory_space<vmem>>, vector<8x200xf32>
    tpu.vector_store %arg3[%c0_5, %c0_6], %6 {strides = array<i32>} : memref<8x200xf32, #tpu.memory_space<vmem>>, vector<8x200xf32>,
    return
  }
}

</mosaic_0001>

<bundles_post_ra>
// kernel: mymodel_forward.1
= control target key start
LH: loop header
LB: loop body
LE: loop exit
PB: predicated region body
PF: predicated region fallthrough
CT: control target
= control target key end

     0   :  { %8 = vsyncpa [#allocation3], 0  ;;  %s320_s0 = inlined_call_operand.hbm [shape: f32[8,10], index: 0, kind: input, shape index: {}]   ;;  %s321_s1 = inlined_call_operand.hbm [shape: f32[10,256], index: 1, kind: input, shape index: {}]   ;;  %s322_s2 = inlined_call_operand.vmem [shape: f32[1,256], index: 2, kind: input, shape index: {}]   ;;  %s323_s3 = inlined_call_operand.hbm [shape: f32[8,200], index: 3, kind: output, shape index: {}]  }
   0x1   :  { %9 = vsyncpa [#allocation6], 0 }
   0x2   :  { %10 = vsyncpa [#allocation4], 0  ;;  %s247_s12 = smov [#allocation2]   ;;  %s248_s14 = smov [#allocation5]  }
   0x3   :  { %s17_s13 = sshll.u32 %s247_s12, 4  ;;  %s26_s15 = sshll.u32 %s248_s14, 4  ;;  %s18_s13 = int_to_ptr.vmem [resolvable:$true] %s17_s13  ;;  %s274_s15 = int_to_ptr.vmem [resolvable:$true] %s26_s15 }
   0x4   :  { %s175_s18 = scalar_lea.hbm %s320_s0, 128 }
   0x5   :  { %p176_p0 = scmp.ne.s32.totalorder %s320_s0, %s175_s18  ;;  %p179_p1 = scmp.lt.u32.totalorder %s175_s18, %s320_s0 }
   0x7   :  { %p181_p2 = pnand %p179_p1, %p176_p0 }
   0x9   :  { %184 = shalt.err (!%p181_p2)
}
   0xa   :  { %s185_s23 = scalar_lea.vmem %s18_s13, 128  ;;  %p190_p4 = scmp.lt.s32.totalorder %s18_s13, %s18_s13 }
   0xb   :  { %p186_p3 = scmp.ne.s32.totalorder %s18_s13, %s185_s23  ;;  %p191_p5 = scmp.lt.s32.totalorder %s185_s23, %s185_s23 }
   0xd   :  { %p192_p6 = por %p191_p5, %p190_p4 }
   0xf   :  { %p193_p7 = pnand %p192_p6, %p186_p3 }
  0x11   :  { %196 = shalt.err (!%p193_p7)
}
  0x12   :  { %20 = dma.hbm_to_vmem [thread:$0]  %s320_s0, 128, %s18_s13, [#allocation3]  }
  0x13   :  { %s197_s28 = scalar_lea.hbm %s321_s1, 512 }
  0x14   :  { %p198_p8 = scmp.ne.s32.totalorder %s321_s1, %s197_s28  ;;  %p201_p9 = scmp.lt.u32.totalorder %s197_s28, %s321_s1 }
  0x16   :  { %p203_p10 = pnand %p201_p9, %p198_p8 }
  0x18   :  { %206 = shalt.err (!%p203_p10)
}
  0x19   :  { %s207_s6 = scalar_lea.vmem %s274_s15, 512  ;;  %p212_p12 = scmp.lt.s32.totalorder %s274_s15, %s274_s15 }
  0x1a   :  { %p208_p11 = scmp.ne.s32.totalorder %s274_s15, %s207_s6  ;;  %p213_p13 = scmp.lt.s32.totalorder %s207_s6, %s207_s6 }
  0x1c   :  { %p214_p0 = por %p213_p13, %p212_p12 }
  0x1e   :  { %p215_p1 = pnand %p214_p0, %p208_p11 }
  0x20   :  { %218 = shalt.err (!%p215_p1)
}
  0x21   :  { %s249_s0 = smov 256   ;;  %s250_s7 = smov 16  }
  0x22   :  { %32 = dma.hbm_to_vmem [thread:$0]  %s321_s1, 512, %s274_s15, [#allocation6], %s249_s0, %s249_s0, %s250_s7  }
  0x23   :  { %241 = dma.done.wait [#allocation3], 128  }
  0x24   :  { %242 = vsyncadd [#allocation3], 4294967168 }
  0x25   :  { %243 = dma.done.wait [#allocation6], 512  }
  0x26   :  { %244 = vsyncadd [#allocation6], 4294966784  ;;  %v251_v0 = vmov 0.0   ;;  %vm62_vm0 = vcmask 1041408   ;;  %vm252_vm1 = vmmov 1   ;;  %v43_v1 = vld [vmem:[#allocation5 + $0x8] sm:$0xff]  ;;  %v48_v8 = vlaneseq }
  0x27   :  { %133 = vmatprep.mubr.f32.mxu0 %v251_v0  ;;  %vm163_vm2 = vmpackc.low %vm62_vm0, %vm252_vm1  ;;  %v45_v2 = vld [vmem:[#allocation5 + $0x18] sm:$0x3]  ;;  %v42_v3 = vld [vmem:[#allocation5] sm:$0xff]  ;;  %vm58_vm3 = vcmask 80896   ;;  %s253_s11 = smov [#allocation7]   ;;  %vm141_vm4 = vcmask 588800  }
  0x28   :  { %v162_v4 = vpack.c.bf16 %v45_v2, %v43_v1  ;;  %v44_v5 = vld [vmem:[#allocation5 + $0x10] sm:$0x3]  ;;  %v41_v7 = vld [vmem:[#allocation2] sm:$0xff]  ;;  %v49_v9 = vshrl.u32 %v48_v8, 7  ;;  %s149_s12 = sshll.u32 %s253_s11, 4  ;;  %s150_s12 = int_to_ptr.vmem [resolvable:$true] %s149_s12 }
  0x29   :  { %v165_v6 = vpack.c.bf16 %v44_v5, %v42_v3  ;;  %v46_v11 = vld [vmem:[%s322_s2] sm:$0x3]  ;;  %s219_s13 = scalar_lea.vmem %s150_s12, 256  ;;  %p224_p3 = scmp.lt.s32.totalorder %s150_s12, %s150_s12 }
  0x2a   :  { %164 = vmatprep.subr.msk.bf16.mxu0 %vm163_vm2, %v162_v4  ;;  %v50_v10 = vsub.s32 0, %v49_v9  ;;  %v54_v12 = vsub.s32 1, %v49_v9  ;;  %p220_p2 = scmp.ne.s32.totalorder %s150_s12, %s219_s13  ;;  %p225_p4 = scmp.lt.s32.totalorder %s219_s13, %s219_s13 }
  0x2b   :  { %167 = vmatpush1.bf16.msk.msra.mxu0 %vm163_vm2, %v165_v6 }
  0x2c   :  { %v51_v13 = vrot.slane %v46_v11, %v50_v10  ;;  %v55_v14 = vrot.slane %v46_v11, %v54_v12  ;;  %p226_p5 = por %p225_p4, %p224_p3 }
  0x2e   :  { %161 = vmatmul.mubr.msk.f32.vlgmr.msra.gmra.mrb[0].mxu0 %vm58_vm3, %v41_v7  ;;  %p227_p6 = pnand %p226_p5, %p220_p2 }
 0x101   :  { %v135_v15 = vpop.f32.mrb[0].mxu0 }
 0x102   :  { %v136_v16 = vadd.f32 %v135_v15, %v51_v13  ;;  %v137_v17 = vpop.f32.mrb[1].mxu0 }
 0x103   :  { %v138_v18 = vadd.f32 %v137_v17, %v55_v14 }
 0x104   :  { %140 = vst [vmem:[#allocation7] sm:$0xff] %v136_v16 }
 0x105   :  { %142 = vst.msk [vmem:[#allocation7 + $0x8] sm:$0xff] %vm141_vm4, %v138_v18 }
 0x106   :  { %230 = shalt.err (!%p227_p6)
}
 0x107   :  { %s231_s15 = scalar_lea.hbm %s323_s3, 256 }
 0x108   :  { %p232_p7 = scmp.ne.s32.totalorder %s323_s3, %s231_s15  ;;  %p235_p8 = scmp.lt.u32.totalorder %s231_s15, %s323_s3 }
 0x10a   :  { %p237_p9 = pnand %p235_p8, %p232_p7 }
 0x10c   :  { %240 = shalt.err (!%p237_p9)
}
 0x10d   :  { %152 = dma.vmem_to_hbm [thread:$0]  %s150_s12, 256, %s323_s3, [#allocation4]  }
 0x10e   :  { %245 = dma.done.wait [#allocation4], 256  }
 0x10f   :  { %246 = vsyncadd [#allocation4], 4294967040 }
 0x110   :  { %156 = vsyncpa [#allocation3], 1 }
 0x111   :  { %157 = vsyncpa [#allocation6], 1 }
 0x112   :  { %158 = vsyncpa [#allocation4], 1 }

</bundles_post_ra>
